<compile_context>
chip_gen: v5e
topology: v5e:2x2
jax: 0.10.0
libtpu: 0.0.40
codegen_flags: <defaults>
</compile_context>

<pallas_src>
import functools

import jax
import jax.numpy as jnp
from jax.experimental import pallas as pl
from jax.experimental.pallas import tpu as pltpu


def _round_up(x, m):
    return ((x + m - 1) // m) * m


def _rope_cache_kernel(theta_ref, phase_ref, posoff_ref, out_ref, *, pos_per_row):
    # theta_ref / phase_ref / posoff_ref: (1, W) fp32, constant across grid steps.
    # out_ref: (tile_r, W); element (r, l) = cos(pos(r, l) * theta[l] - phase[l])
    #   pos(r, l) = (row0 + r) * pos_per_row + posoff[l]
    tile_r = out_ref.shape[0]

    theta = theta_ref[...]      # (1, W)
    phase = phase_ref[...]      # (1, W)
    pos_off = posoff_ref[...]   # (1, W)

    row0 = pl.program_id(0) * tile_r
    rows = row0 + jax.lax.broadcasted_iota(jnp.int32, (tile_r, 1), 0)
    pos = rows.astype(jnp.float32) * float(pos_per_row) + pos_off      # (tile_r, W)

    angle = pos * theta - phase                                         # (tile_r, W)
    # Single EUP transcendental per element; fused optional half-precision cast.
    out_ref[...] = jnp.cos(angle).astype(out_ref.dtype)


class RotaryEmbeddingChatglm3:
    """JAX/Pallas port of the PyTorch module. inv_freq built in __init__."""

    _LANE = 128
    _TILE_BYTES = 2 * 1024 * 1024  # ~2 MiB output tile (4 MiB double-buffered)

    def __init__(self, dim, original_impl=False, dtype=jnp.float32, base=10000):
        self.dim = dim
        self.original_impl = original_impl
        self.base = base
        self.dtype = dtype
        # inv_freq = 1 / base^(arange(0, dim, 2) / dim)  -> shape [dim // 2]
        self.inv_freq = (
            1.0 / (base ** (jnp.arange(0, dim, 2, dtype=jnp.float32) / dim))
        ).astype(jnp.float32)

    def _out_dtype(self):
        d = jnp.dtype(self.dtype)
        if d == jnp.dtype(jnp.bfloat16):
            return jnp.bfloat16
        if d in (jnp.dtype(jnp.float16), jnp.dtype(jnp.int8)):
            return jnp.float16
        return jnp.float32

    def __call__(self, max_seq_len, offset=0):
        # NOTE: `offset` is ignored, matching the PyTorch reference forward().
        dim = self.dim
        half = dim // 2
        out_dtype = self._out_dtype()
        itemsize = jnp.dtype(out_dtype).itemsize
        LANE = self._LANE

        # Interleaved per-dim vectors: lanes (2k, 2k+1) carry inv_freq[k];
        # phase is 0 on even (cos) lanes, pi/2 on odd (sin) lanes so that
        # cos(x - phase) gives [cos(x), sin(x)] interleaved.
        theta_il = jnp.repeat(self.inv_freq, 2)                                  # (dim,)
        phase_il = jnp.tile(jnp.array([0.0, jnp.pi / 2.0], jnp.float32), half)   # (dim,)

        lane_packed = (
            dim <= LANE and LANE % dim == 0 and (max_seq_len * dim) % LANE == 0
        )

        if lane_packed:
            # Pack P = 128 // dim consecutive positions per 128-wide row.
            P = LANE // dim
            W = LANE
            R = (max_seq_len * dim) // LANE
            theta_lane = jnp.tile(theta_il, P).reshape(1, W)
            phase_lane = jnp.tile(phase_il, P).reshape(1, W)
            pos_off = jnp.repeat(
                jnp.arange(P, dtype=jnp.float32), dim
            ).reshape(1, W)
        else:
            # Fallback: one position per row, W = dim lanes.
            P = 1
            W = dim
            R = max_seq_len
            theta_lane = theta_il.reshape(1, W)
            phase_lane = phase_il.reshape(1, W)
            pos_off = jnp.zeros((1, W), jnp.float32)

        # Row tile: big (~2 MiB) tiles, multiple of 8 (16 for 16-bit output),
        # but keep >= 2 grid steps so v7x's two TensorCores can split the axis.
        sub = 8 if itemsize == 4 else 16
        if R <= sub:
            tile_r = R
        else:
            cap = max(sub, ((self._TILE_BYTES // (W * itemsize)) // sub) * sub)
            half_rows = _round_up(pl.cdiv(R, 2), sub)
            tile_r = max(sub, min(cap, half_rows))
        grid = (pl.cdiv(R, tile_r),)

        out_bytes = R * W * itemsize
        cost = pl.CostEstimate(
            flops=3 * R * W,              # mul + mul + sub per element
            transcendentals=R * W,        # single cos per element
            bytes_accessed=out_bytes + 3 * W * 4,
        )

        flat = pl.pallas_call(
            functools.partial(_rope_cache_kernel, pos_per_row=P),
            out_shape=jax.ShapeDtypeStruct((R, W), out_dtype),
            grid=grid,
            in_specs=[
                pl.BlockSpec((1, W), lambda i: (0, 0)),
                pl.BlockSpec((1, W), lambda i: (0, 0)),
                pl.BlockSpec((1, W), lambda i: (0, 0)),
            ],
            out_specs=pl.BlockSpec((tile_r, W), lambda i: (i, 0)),
            compiler_params=pltpu.CompilerParams(
                dimension_semantics=("parallel",),
            ),
            cost_estimate=cost,
        )(theta_lane, phase_lane, pos_off)

        # Free contiguous reshape: row-major flat slab -> [seq, dim//2, 2]
        # ([..., 0] = cos, [..., 1] = sin), matching torch.stack(..., dim=-1).
        return flat.reshape(max_seq_len, half, 2)


def _ref_cache(dim, seq):
    # Pure-JAX reference (same math as PyTorch forward_impl, fp32).
    theta = 1.0 / (10000.0 ** (jnp.arange(0, dim, 2, dtype=jnp.float32) / dim))
    seq_idx = jnp.arange(seq, dtype=jnp.float32)
    idx_theta = jnp.outer(seq_idx, theta)
    return jnp.stack([jnp.cos(idx_theta), jnp.sin(idx_theta)], axis=-1)


if __name__ == "__main__":
    _ = jax.random.PRNGKey(0)  # no random inputs needed; kept for convention

    # ---- main small test: fp32, lane-packed path (dim=32, seq=8) ----
    dim, max_seq_len = 32, 8
    rope = RotaryEmbeddingChatglm3(dim=dim)
    cache = jax.block_until_ready(rope(max_seq_len))
    ref = _ref_cache(dim, max_seq_len)
    assert cache.shape == (max_seq_len, dim // 2, 2), cache.shape
    assert cache.dtype == jnp.float32, cache.dtype
    assert jnp.allclose(cache, ref, atol=1e-5, rtol=1e-5)

    # ---- bf16 path (cast fused into the kernel store) ----
    rope_bf16 = RotaryEmbeddingChatglm3(dim=dim, dtype=jnp.bfloat16)
    cache_bf16 = jax.block_until_ready(rope_bf16(max_seq_len))
    assert cache_bf16.shape == (max_seq_len, dim // 2, 2), cache_bf16.shape
    assert cache_bf16.dtype == jnp.bfloat16, cache_bf16.dtype
    assert jnp.allclose(cache_bf16.astype(jnp.float32), ref, atol=1e-2, rtol=1e-2)

    # ---- multi-step grid, lane-packed path (dim=32, seq=64 -> 2 grid steps) ----
    cache64 = jax.block_until_ready(RotaryEmbeddingChatglm3(dim=32)(64))
    assert jnp.allclose(cache64, _ref_cache(32, 64), atol=1e-5, rtol=1e-5)

    # ---- fallback path (dim does not divide 128) ----
    cache_fb = jax.block_until_ready(RotaryEmbeddingChatglm3(dim=48)(16))
    assert cache_fb.shape == (16, 24, 2), cache_fb.shape
    assert jnp.allclose(cache_fb, _ref_cache(48, 16), atol=1e-5, rtol=1e-5)

    print("KERNEL_OK")
</pallas_src>

<mosaic_0001>
module attributes {stable_mosaic.version = 11 : i64} {
  func.func @_rope_cache_kernel(%arg0: i32, %arg1: memref<1x128xf32, #tpu.memory_space<vmem>>, %arg2: memref<1x128xf32, #tpu.memory_space<vmem>>, %arg3: memref<1x128xf32, #tpu.memory_space<vmem>>, %arg4: memref<2x128xf32, #tpu.memory_space<vmem>>) attributes {dimension_semantics = [#tpu.dimension_semantics<parallel>], iteration_bounds = array<i64: 1>, scalar_prefetch = 0 : i64, scratch_operands = 0 : i64, tpu.core_type = #tpu.core_type<tc>, window_params = [{pipeline_mode = #tpu.pipeline_mode<synchronous>, transform_indices = @transform_0, window_bounds = array<i64: 1, 128>}, {pipeline_mode = #tpu.pipeline_mode<synchronous>, transform_indices = @transform_1, window_bounds = array<i64: 1, 128>}, {pipeline_mode = #tpu.pipeline_mode<synchronous>, transform_indices = @transform_2, window_bounds = array<i64: 1, 128>}, {transform_indices = @transform_3, window_bounds = array<i64: 2, 128>}]} {
    %c0 = arith.constant 0 : index
    %c0_0 = arith.constant 0 : index
    %0 = vector.load %arg1[%c0, %c0_0] : memref<1x128xf32, #tpu.memory_space<vmem>>, vector<1x128xf32>
    %c0_1 = arith.constant 0 : index
    %c0_2 = arith.constant 0 : index
    %1 = vector.load %arg2[%c0_1, %c0_2] : memref<1x128xf32, #tpu.memory_space<vmem>>, vector<1x128xf32>
    %c0_3 = arith.constant 0 : index
    %c0_4 = arith.constant 0 : index
    %2 = vector.load %arg3[%c0_3, %c0_4] : memref<1x128xf32, #tpu.memory_space<vmem>>, vector<1x128xf32>
    %c2_i32 = arith.constant 2 : i32
    %3 = arith.muli %arg0, %c2_i32 : i32
    %4 = tpu.iota {dimensions = array<i32: 0>} : vector<2x1xi32>
    %5 = vector.broadcast %3 : i32 to vector<2x1xi32>
    %6 = arith.addi %5, %4 : vector<2x1xi32>
    %7 = arith.sitofp %6 : vector<2x1xi32> to vector<2x1xf32>
    %cst = arith.constant 4.000000e+00 : f32
    %8 = vector.broadcast %cst : f32 to vector<2x1xf32>
    %9 = arith.mulf %7, %8 : vector<2x1xf32>
    %10 = vector.broadcast %9 : vector<2x1xf32> to vector<2x128xf32>
    %11 = vector.broadcast %2 : vector<1x128xf32> to vector<2x128xf32>
    %12 = arith.addf %10, %11 : vector<2x128xf32>
    %13 = vector.broadcast %0 : vector<1x128xf32> to vector<2x128xf32>
    %14 = arith.mulf %12, %13 : vector<2x128xf32>
    %15 = vector.broadcast %1 : vector<1x128xf32> to vector<2x128xf32>
    %16 = arith.subf %14, %15 : vector<2x128xf32>
    %17 = math.cos %16 : vector<2x128xf32>
    %c0_5 = arith.constant 0 : index
    %c0_6 = arith.constant 0 : index
    %18 = vector.load %arg4[%c0_5, %c0_6] : memref<2x128xf32, #tpu.memory_space<vmem>>, vector<2x128xf32>
    tpu.vector_store %arg4[%c0_5, %c0_6], %17 {strides = array<i32>} : memref<2x128xf32, #tpu.memory_space<vmem>>, vector<2x128xf32>,
    return
  }
  func.func @transform_0(%arg0: i32) -> (i32, i32) {
    %c0_i32 = arith.constant 0 : i32
    %c0_i32_0 = arith.constant 0 : i32
    %c0_i32_1 = arith.constant 0 : i32
    return %c0_i32, %c0_i32_0 : i32, i32
  }
  func.func @transform_1(%arg0: i32) -> (i32, i32) {
    %c0_i32 = arith.constant 0 : i32
    %c0_i32_0 = arith.constant 0 : i32
    %c0_i32_1 = arith.constant 0 : i32
    return %c0_i32, %c0_i32_0 : i32, i32
  }
  func.func @transform_2(%arg0: i32) -> (i32, i32) {
    %c0_i32 = arith.constant 0 : i32
    %c0_i32_0 = arith.constant 0 : i32
    %c0_i32_1 = arith.constant 0 : i32
    return %c0_i32, %c0_i32_0 : i32, i32
  }
  func.func @transform_3(%arg0: i32) -> (i32, i32) {
    %c0_i32 = arith.constant 0 : i32
    %c0_i32_0 = arith.constant 0 : i32
    return %arg0, %c0_i32 : i32, i32
  }
}

</mosaic_0001>

<bundles_post_ra>
// kernel: tpu_custom_call.1
= control target key start
LH: loop header
LB: loop body
LE: loop exit
PB: predicated region body
PF: predicated region fallthrough
CT: control target
= control target key end

     0   :  { %8 = vsyncpa [#allocation3], 0  ;;  %s428_s0 = inlined_call_operand.hbm [shape: f32[1,128], index: 0, kind: input, shape index: {}]   ;;  %s429_s1 = inlined_call_operand.hbm [shape: f32[1,128], index: 1, kind: input, shape index: {}]   ;;  %s430_s2 = inlined_call_operand.vmem [shape: f32[1,128], index: 2, kind: input, shape index: {}]   ;;  %s431_s3 = inlined_call_operand.hbm [shape: f32[2,128], index: 3, kind: output, shape index: {}]  }
   0x1   :  { %9 = vsyncpa [#allocation6], 0 }
   0x2   :  { %10 = vsyncpa [#allocation4], 0  ;;  %s16_s14 = sshll.u32 %s428_s0, 4  ;;  %s332_s15 = smov [#allocation2]   ;;  %s17_s14 = int_to_ptr.hbm [resolvable:$true] %s16_s14 }
   0x3   :  { %s18_s16 = sshll.u32 %s332_s15, 4  ;;  %s27_s19 = sshll.u32 %s429_s1, 4  ;;  %s19_s16 = int_to_ptr.vmem [resolvable:$true] %s18_s16  ;;  %s28_s19 = int_to_ptr.hbm [resolvable:$true] %s27_s19 }
   0x4   :  { %21 = dma.hbm_to_vmem [thread:$0]  %s17_s14, 16, %s19_s16, [#allocation3]  }
   0x5   :  { %s333_s20 = smov [#allocation5]  }
   0x6   :  { %s29_s21 = sshll.u32 %s333_s20, 4  ;;  %s30_s21 = int_to_ptr.vmem [resolvable:$true] %s29_s21 }
   0x7   :  { %32 = dma.hbm_to_vmem [thread:$0]  %s28_s19, 16, %s30_s21, [#allocation6]  }
   0x8   :  { %326 = dma.done.wait [#allocation3], 16  }
   0x9   :  { %327 = vsyncadd [#allocation3], 4294967280 }
   0xa   :  { %328 = dma.done.wait [#allocation6], 16  }
   0xb   :  { %329 = vsyncadd [#allocation6], 4294967280  ;;  %v47_v0 = vlaneseq  ;;  %v251_v4 = vld [vmem:[%s430_s2] ss:$0 sm:$0xff]  ;;  %v253_v7 = vld [vmem:[#allocation5] ss:$0 sm:$0xff] }
   0xc   :  { %v252_v5 = vld [vmem:[#allocation2] ss:$0 sm:$0xff]  ;;  %v334_v21 = vmov 683565275   ;;  %v335_v23 = vmov 2475754826  }
   0xd   :  { %v48_v1 = vshrl.u32 %v47_v0, 7  ;;  %v336_v25 = vmov 2131351028   ;;  %v337_v27 = vmov 2102212464   ;;  %s341_s1 = smov [#allocation7]  }
   0xe   :  { %v338_v29 = vmov 920167782   ;;  %v339_v35 = vmov 1326507024   ;;  %s225_s2 = sshll.u32 %s341_s1, 4  ;;  %s227_s25 = sshll.u32 %s431_s3, 4  ;;  %s226_s2 = int_to_ptr.vmem [resolvable:$true] %s225_s2  ;;  %s228_s25 = int_to_ptr.hbm [resolvable:$true] %s227_s25 }
   0xf   :  { %v51_v2 = vcvt.s32.f32 %v48_v1 }
  0x11   :  { %v52_v3 = vmul.f32 4.0, %v51_v2 }
  0x13   :  { %v56_v6 = vadd.f32 %v251_v4, %v52_v3 }
  0x15   :  { %v60_v8 = vmul.f32 %v252_v5, %v56_v6 }
  0x17   :  { %v371_v9 = vsub.f32 %v60_v8, %v253_v7 }
  0x19   :  { %v68_v10 = vand.u32 2139095040, %v371_v9  ;;  %v65_v12 = vand.u32 2147483647, %v371_v9  ;;  %vm67_vm12 = vcmp.lt.s32.totalorder %v371_v9, 0 }
  0x1b   :  { %v69_v11 = vshrl.u32 %v68_v10, 23  ;;  %v72_v15 = vand.u32 8388607, %v65_v12  ;;  %v340_v10 = vmov 0   ;;  %vm415_vm13 = vcmp.le.f32.partialorder %v65_v12, 0.7853982 }
  0x1d   :  { %v238_v13 = vadd.s32 4294967169, %v69_v11  ;;  %v73_v18 = vor.u32 8388608, %v72_v15 }
  0x1f   :  { %v75_v14 = vadd.s32 1, %v238_v13  ;;  %v380_v37 = vshll.u32 %v73_v18, 8 }
  0x21   :  { %vm76_vm0 = vcmp.gt.s32.totalorder %v75_v14, 0  ;;  %v114_v49 = vand.u32 65535, %v380_v37  ;;  %v115_v50 = vshrl.u32 %v380_v37, 16 }
  0x22   :  { %v77_v16 = vsel %vm76_vm0, %v75_v14, 0 }
  0x23   :  { %v79_v17 = vand.u32 31, %v77_v16  ;;  %v377_v19 = vshrl.u32 %v77_v16, 5 }
  0x25   :  { %v80_v20 = vsub.s32 32, %v79_v17  ;;  %v82_v22 = vshll.u32 %v334_v21, %v79_v17  ;;  %v85_v24 = vshll.u32 %v335_v23, %v79_v17  ;;  %v88_v26 = vshll.u32 %v336_v25, %v79_v17 }
  0x26   :  { %v91_v28 = vshll.u32 %v337_v27, %v79_v17  ;;  %v94_v30 = vshll.u32 %v338_v29, %v79_v17  ;;  %vm97_vm1 = vcmp.lt.s32.totalorder %v377_v19, 1  ;;  %vm100_vm2 = vcmp.lt.s32.totalorder %v377_v19, 4 }
  0x27   :  { %v83_v31 = vshrl.u32 %v335_v23, %v80_v20  ;;  %v86_v32 = vshrl.u32 %v336_v25, %v80_v20  ;;  %v89_v33 = vshrl.u32 %v337_v27, %v80_v20  ;;  %v92_v34 = vshrl.u32 %v338_v29, %v80_v20 }
  0x28   :  { %v95_v36 = vshrl.u32 %v339_v35, %v80_v20  ;;  %vm99_vm3 = vcmp.lt.s32.totalorder %v377_v19, 3  ;;  %vm98_vm4 = vcmp.lt.s32.totalorder %v377_v19, 2  ;;  %v81_v57 = vshrl.u32 %v334_v21, %v80_v20 }
  0x29   :  { %v84_v38 = vor.u32 %v83_v31, %v82_v22  ;;  %v87_v39 = vor.u32 %v86_v32, %v85_v24  ;;  %v90_v40 = vor.u32 %v89_v33, %v88_v26  ;;  %v93_v41 = vor.u32 %v92_v34, %v91_v28 }
  0x2a   :  { %v96_v42 = vor.u32 %v95_v36, %v94_v30 }
  0x2b   :  { %v105_v43 = vsel %vm97_vm1, %v84_v38, %v87_v39  ;;  %v109_v44 = vsel %vm97_vm1, %v87_v39, %v90_v40  ;;  %v106_v45 = vsel %vm100_vm2, %v93_v41, 920167782  ;;  %v101_v6 = vsel %vm97_vm1, %v81_v57, %v84_v38 }
  0x2c   :  { %v110_v46 = vsel %vm100_vm2, %v96_v42, 1326507024  ;;  %v107_v47 = vsel %vm99_vm3, %v90_v40, %v106_v45  ;;  %v102_v8 = vsel %vm100_vm2, %v90_v40, 2102212464  ;;  %vm208_vm1 = vweird.f32 %v371_v9 }
  0x2d   :  { %v111_v48 = vsel %vm99_vm3, %v93_v41, %v110_v46  ;;  %v108_v51 = vsel %vm98_vm4, %v105_v43, %v107_v47  ;;  %v103_v21 = vsel %vm99_vm3, %v87_v39, %v102_v8 }
  0x2e   :  { %v112_v52 = vsel %vm98_vm4, %v109_v44, %v111_v48  ;;  %v138_v55 = vand.u32 65535, %v108_v51  ;;  %v139_v56 = vshrl.u32 %v108_v51, 16  ;;  %v104_v29 = vsel %vm98_vm4, %v101_v6, %v103_v21 }
  0x2f   :  { %v116_v53 = vand.u32 65535, %v112_v52  ;;  %v117_v54 = vshrl.u32 %v112_v52, 16  ;;  %v158_v33 = vmul.u32 %v380_v37, %v104_v29 }
  0x30   :  { %v140_v61 = vmul.u32 %v138_v55, %v114_v49  ;;  %v141_v62 = vmul.u32 %v139_v56, %v114_v49  ;;  %v142_v63 = vmul.u32 %v138_v55, %v115_v50  ;;  %v143_v3 = vmul.u32 %v139_v56, %v115_v50 }
  0x31   :  { %v118_v58 = vmul.u32 %v116_v53, %v114_v49  ;;  %v119_v59 = vmul.u32 %v117_v54, %v114_v49  ;;  %v120_v60 = vmul.u32 %v116_v53, %v115_v50  ;;  %v121_v0 = vmul.u32 %v117_v54, %v115_v50 }
  0x32   :  { %v144_v4 = vshll.u32 %v141_v62, 16  ;;  %v146_v5 = vshll.u32 %v142_v63, 16  ;;  %v145_v18 = vshrl.u32 %v141_v62, 16  ;;  %v147_v25 = vshrl.u32 %v142_v63, 16 }
  0x33   :  { %v122_v1 = vshll.u32 %v119_v59, 16  ;;  %v124_v2 = vshll.u32 %v120_v60, 16  ;;  %v123_v14 = vshrl.u32 %v119_v59, 16  ;;  %v125_v22 = vshrl.u32 %v120_v60, 16 }
  0x34   :  { %vm148_vm6 = vc.u32 %v140_v61, %v144_v4  ;;  %v150_v13 = vadd.s32 %v144_v4, %v140_v61 }
  0x35   :  { %vm126_vm5 = vc.u32 %v118_v58, %v122_v1  ;;  %v128_v7 = vadd.s32 %v122_v1, %v118_v58  ;;  %v149_v16 = vsel %vm148_vm6, 1, %v340_v10 }
  0x36   :  { %v127_v11 = vsel %vm126_vm5, 1, %v340_v10  ;;  %v151_v20 = vadd.s32 %v149_v16, %v143_v3  ;;  %vm152_vm8 = vc.u32 %v150_v13, %v146_v5  ;;  %v154_v28 = vadd.s32 %v150_v13, %v146_v5 }
  0x37   :  { %v129_v15 = vadd.s32 %v127_v11, %v121_v0  ;;  %vm130_vm7 = vc.u32 %v128_v7, %v124_v2  ;;  %v153_v24 = vsel %vm152_vm8, 1, %v340_v10 }
  0x38   :  { %v131_v17 = vsel %vm130_vm7, 1, %v340_v10  ;;  %v155_v26 = vadd.s32 %v153_v24, %v151_v20 }
  0x39   :  { %v133_v23 = vadd.s32 %v131_v17, %v129_v15 }
  0x3a   :  { %v156_v30 = vadd.s32 %v155_v26, %v145_v18 }
  0x3b   :  { %v134_v27 = vadd.s32 %v133_v23, %v123_v14 }
  0x3c   :  { %v157_v32 = vadd.s32 %v156_v30, %v147_v25 }
  0x3d   :  { %v135_v31 = vadd.s32 %v134_v27, %v125_v22 }
  0x3e   :  { %v161_v34 = vadd.s32 1, %v157_v32 }
  0x3f   :  { %vm160_vm9 = vc.u32 %v135_v31, %v154_v28  ;;  %v159_v19 = vadd.s32 %v154_v28, %v135_v31 }
  0x40   :  { %v162_v35 = vsel %vm160_vm9, %v161_v34, %v157_v32 }
  0x41   :  { %v163_v36 = vadd.s32 %v162_v35, %v158_v33 }
  0x43   :  { %v164_v38 = vadd.s32 536870912, %v163_v36 }
  0x45   :  { %v165_v39 = vshrl.u32 %v164_v38, 30 }
  0x47   :  { %v166_v40 = vshll.u32 %v165_v39, 30  ;;  %v189_v60 = vsub.s32 4, %v165_v39 }
  0x49   :  { %v167_v41 = vsub.s32 %v163_v36, %v166_v40  ;;  %v190_v1 = vsel %vm67_vm12, %v189_v60, %v165_v39 }
  0x4a   :  { %v192_v4 = vsel %vm415_vm13, 0, %v190_v1 }
  0x4b   :  { %vm168_vm10 = vcmp.lt.s32.totalorder %v167_v41, 0  ;;  %v169_v42 = vsub.s32 0, %v167_v41  ;;  %v209_v8 = vand.u32 3, %v192_v4 }
  0x4d   :  { %v170_v43 = vsel %vm168_vm10, %v169_v42, %v167_v41  ;;  %vm214_vm14 = vcmp.eq.s32.totalorder %v209_v8, 2  ;;  %vm211_vm15 = vcmp.eq.s32.totalorder %v209_v8, 0  ;;  %vm210_vm0 = vcmp.lt.s32.totalorder %v209_v8, 2 }
  0x4e   :  { %v171_v44 = vclz %v170_v43 }
  0x50   :  { %v239_v45 = vadd.s32 4294967294, %v171_v44 }
  0x52   :  { %vm240_vm11 = vcmp.lt.s32.totalorder %v239_v45, 0 }
  0x53   :  { %v174_v46 = vsel %vm240_vm11, 0, %v239_v45 }
  0x54   :  { %v175_v47 = vsub.s32 32, %v174_v46  ;;  %v176_v48 = vshll.u32 %v167_v41, %v174_v46  ;;  %v179_v49 = vsub.s32 4294967266, %v174_v46 }
  0x56   :  { %v177_v37 = vshrl.u32 %v159_v19, %v175_v47  ;;  %v180_v50 = vadd.s32 127, %v179_v49 }
  0x58   :  { %v178_v51 = vor.u32 %v177_v37, %v176_v48  ;;  %v181_v52 = vshll.u32 %v180_v50, 23 }
  0x5a   :  { %v182_v53 = vor.u32 4788187, %v181_v52  ;;  %v185_v54 = vcvt.s32.f32 %v178_v51 }
  0x5c   :  { %v183_v55 = vand.u32 2147483647, %v182_v53 }
  0x5e   :  { %v186_v56 = vmul.f32 %v185_v54, %v183_v55 }
  0x60   :  { %v187_v58 = vxor.u32 2147483648, %v186_v56 }
  0x62   :  { %v188_v59 = vsel %vm67_vm12, %v187_v58, %v186_v56 }
  0x63   :  { %v191_v61 = vsel %vm415_vm13, %v371_v9, %v188_v59 }
  0x64   :  { %v193_v62 = vmul.f32 %v191_v61, %v191_v61 }
  0x66   :  { %v194_v63 = vmul.f32 -0.001358992, %v193_v62  ;;  %v201_v0 = vmul.f32 -0.00019511016, %v193_v62 }
  0x68   :  { %v195_v2 = vadd.f32 0.041655596, %v194_v63  ;;  %v202_v3 = vadd.f32 0.008332121, %v201_v0 }
  0x6a   :  { %v196_v12 = vmul.f32 %v195_v2, %v193_v62  ;;  %v203_v5 = vmul.f32 %v202_v3, %v193_v62 }
  0x6c   :  { %v197_v6 = vadd.f32 -0.4999988, %v196_v12  ;;  %v204_v7 = vadd.f32 -0.16666654, %v203_v5 }
  0x6e   :  { %v198_v10 = vmul.f32 %v197_v6, %v193_v62  ;;  %v205_v11 = vmul.f32 %v204_v7, %v193_v62 }
  0x70   :  { %v199_v13 = vadd.f32 1.0, %v198_v10  ;;  %v206_v14 = vadd.f32 1.0, %v205_v11 }
  0x72   :  { %v207_v15 = vmul.f32 %v206_v14, %v191_v61  ;;  %v215_v16 = vxor.u32 2147483648, %v199_v13 }
  0x74   :  { %v212_v17 = vxor.u32 2147483648, %v207_v15  ;;  %v216_v18 = vsel %vm214_vm14, %v215_v16, %v207_v15 }
  0x76   :  { %v213_v20 = vsel %vm211_vm15, %v199_v13, %v212_v17 }
  0x77   :  { %v217_v21 = vsel %vm210_vm0, %v213_v20, %v216_v18 }
  0x78   :  { %v218_v22 = vsel %vm208_vm1, nan, %v217_v21 }
  0x79   :  { %219 = vst [vmem:[#allocation7] sm:$0x3] %v218_v22 }
  0x7a   :  { %230 = dma.vmem_to_hbm [thread:$0]  %s226_s2, 32, %s228_s25, [#allocation4]  }
  0x7b   :  { %330 = dma.done.wait [#allocation4], 32  }
  0x7c   :  { %331 = vsyncadd [#allocation4], 4294967264 }
  0x7d   :  { %235 = vsyncpa [#allocation3], 1 }
  0x7e   :  { %236 = vsyncpa [#allocation6], 1 }
  0x7f   :  { %237 = vsyncpa [#allocation4], 1 }

</bundles_post_ra>
